<compile_context>
chip_gen: v6e
topology: v6e:2x2x1
jax: 0.10.0
libtpu: 0.0.40
codegen_flags: <defaults>
</compile_context>

<pallas_src>
import functools

import jax
import jax.numpy as jnp
from jax.experimental import pallas as pl
from jax.experimental.pallas import tpu as pltpu

_LANE = 128


def _poscnn_kernel(xc_ref, xt_ref, xb_ref, w_ref, b_ref, o_ref, xp_ref, *, TH, W, nH):
    """One (batch, row-strip, channel-tile) block of depthwise 3x3 conv + bias + residual.

    xc_ref: (1, TH, W, TC)   centre row strip of the activation (unpadded)
    xt_ref: (1, 1, W, TC)    row just above the strip (clamped; zeroed when i == 0)
    xb_ref: (1, 1, W, TC)    row just below the strip (clamped; zeroed when i == nH-1)
    w_ref:  (3, 3, TC)       depthwise taps (per-channel)
    b_ref:  (1, TC)          bias
    o_ref:  (1, TH, W, TC)   conv(x) + bias + x
    xp_ref: (TH+2, W+2, TC)  f32 scratch: halo-extended strip with a zero frame
    """
    i = pl.program_id(1)
    TC = b_ref.shape[-1]

    # --- assemble the halo-extended strip in VMEM (zero frame, interior = activation) ---
    zcol = jnp.zeros((TH + 2, 1, TC), jnp.float32)
    xp_ref[:, 0:1, :] = zcol                    # left zero column
    xp_ref[:, W + 1:W + 2, :] = zcol            # right zero column

    xc = xc_ref[0].astype(jnp.float32)          # (TH, W, TC), cast once
    xp_ref[1:TH + 1, 1:W + 1, :] = xc
    xp_ref[0:1, 1:W + 1, :] = jnp.where(i > 0, xt_ref[0].astype(jnp.float32), 0.0)
    xp_ref[TH + 1:TH + 2, 1:W + 1, :] = jnp.where(
        i < nH - 1, xb_ref[0].astype(jnp.float32), 0.0)

    # --- 9-tap depthwise conv; bias + residual fused into the centre tap --------------
    wgt = w_ref[...].astype(jnp.float32)                        # (3, 3, TC), hoisted cast
    bias = b_ref[...].astype(jnp.float32).reshape(1, 1, TC)

    acc = xc * (wgt[1, 1].reshape(1, 1, TC) + 1.0) + bias       # centre tap + residual + b
    for dh in range(3):
        for dw in range(3):
            if dh == 1 and dw == 1:
                continue
            # static-offset ref reads: the (dh, dw) shift is folded into vld addressing
            acc = acc + xp_ref[dh:dh + TH, dw:dw + W, :] * wgt[dh, dw].reshape(1, 1, TC)

    o_ref[0] = acc.astype(o_ref.dtype)


def _pick_row_tile(H, W, TC, target_bytes=2 * 1024 * 1024):
    """Largest divisor of H whose f32 (rows, W, TC) strip stays under ~target_bytes."""
    per_row = max(1, W * TC * 4)
    max_rows = max(1, target_bytes // per_row)
    best = 1
    for d in range(1, H + 1):
        if H % d == 0 and d <= max_rows:
            best = d
    return best


def poscnn_forward(x, weight, bias, H, W, s=1, row_tile=None):
    """PosCNN forward.  x: (B, N=H*W, C); weight: (3, 3, C) depthwise; bias: (C,)."""
    # TODO(synk): only the s == 1 (stride-1 + residual) branch is implemented; the
    # strided s != 1 branch (no residual) of the PyTorch module is not covered here.
    assert s == 1
    B, N, C = x.shape
    assert N == H * W

    # Lane-dense channels: round C up to a multiple of 128 only when necessary.
    Cp = ((C + _LANE - 1) // _LANE) * _LANE
    x4 = x.reshape(B, H, W, C)
    w3, b1 = weight, bias
    if Cp != C:
        # TODO(synk): for genuinely small C a token-to-lane transposed layout would avoid
        # this pad traffic; the padded channels are all zero and are sliced off below.
        x4 = jnp.pad(x4, ((0, 0), (0, 0), (0, 0), (0, Cp - C)))
        w3 = jnp.pad(weight, ((0, 0), (0, 0), (0, Cp - C)))
        b1 = jnp.pad(bias, ((0, Cp - C),))
    b2 = b1.reshape(1, Cp)

    TC = 256 if Cp % 256 == 0 else _LANE
    nC = Cp // TC
    TH = row_tile if row_tile is not None else _pick_row_tile(H, W, TC)
    assert H % TH == 0, "row_tile must divide H"
    nH = H // TH

    kernel = functools.partial(_poscnn_kernel, TH=TH, W=W, nH=nH)

    # Rough per-step footprint (double-buffered blocks + f32 scratch/acc) with headroom,
    # capped so it always fits inside v7x's 64 MiB physical VMEM.
    blk = TH * W * TC * 4
    vmem_limit = int(min(64 * 1024 * 1024, max(32 * 1024 * 1024, 16 * blk)))

    out = pl.pallas_call(
        kernel,
        out_shape=jax.ShapeDtypeStruct((B, H, W, Cp), x.dtype),
        grid_spec=pltpu.PrefetchScalarGridSpec(
            num_scalar_prefetch=0,
            grid=(B, nH, nC),
            in_specs=[
                # centre strip
                pl.BlockSpec((1, TH, W, TC), lambda b, i, c: (b, i, 0, c)),
                # 1-row halos above/below the strip; the row index is clamped at the
                # image edge and the kernel zeroes the row when it is out of range.
                pl.BlockSpec((1, 1, W, TC),
                             lambda b, i, c: (b, jnp.maximum(i * TH - 1, 0), 0, c)),
                pl.BlockSpec((1, 1, W, TC),
                             lambda b, i, c: (b, jnp.minimum(i * TH + TH, H - 1), 0, c)),
                pl.BlockSpec((3, 3, TC), lambda b, i, c: (0, 0, c)),
                pl.BlockSpec((1, TC), lambda b, i, c: (0, c)),
            ],
            out_specs=pl.BlockSpec((1, TH, W, TC), lambda b, i, c: (b, i, 0, c)),
            scratch_shapes=[pltpu.VMEM((TH + 2, W + 2, TC), jnp.float32)],
        ),
        compiler_params=pltpu.CompilerParams(
            dimension_semantics=("parallel", "parallel", "parallel"),
            vmem_limit_bytes=vmem_limit),
    )(x4, x4, x4, w3, b2)

    if Cp != C:
        out = out[..., :C]
    return out.reshape(B, N, C)


def _reference(x, weight, bias, H, W):
    """Plain-JAX reference: depthwise 3x3 conv (stride 1, pad 1) + bias + residual."""
    B, N, C = x.shape
    x_nhwc = x.reshape(B, H, W, C)
    w_hwio = weight.reshape(3, 3, 1, C)
    y = jax.lax.conv_general_dilated(
        x_nhwc, w_hwio, window_strides=(1, 1), padding=((1, 1), (1, 1)),
        dimension_numbers=("NHWC", "HWIO", "NHWC"), feature_group_count=C)
    y = y + bias.reshape(1, 1, 1, C) + x_nhwc
    return y.reshape(B, N, C)


if __name__ == "__main__":
    key = jax.random.PRNGKey(0)

    def run_case(case, B, H, W, C, row_tile):
        kx, kw, kb = jax.random.split(jax.random.fold_in(key, case), 3)
        N = H * W
        x = jax.random.normal(kx, (B, N, C), dtype=jnp.float32)
        # PyTorch depthwise weight (C, 1, 3, 3) corresponds to (3, 3, C) here.
        weight = 0.1 * jax.random.normal(kw, (3, 3, C), dtype=jnp.float32)
        bias = 0.05 * jax.random.normal(kb, (C,), dtype=jnp.float32)

        out = jax.block_until_ready(
            poscnn_forward(x, weight, bias, H, W, s=1, row_tile=row_tile))
        ref = _reference(x, weight, bias, H, W)
        assert out.shape == (B, N, C)
        assert jnp.allclose(out, ref, atol=1e-4, rtol=1e-4), f"mismatch in case {case}"

    # C=64 exercises the lane-padding path; row_tile=8 gives two row strips per image
    # so both halo-masking branches (top edge / bottom edge) run.
    run_case(0, B=2, H=16, W=16, C=64, row_tile=8)
    # C=128 is already lane dense; two strips, single channel tile.
    run_case(1, B=1, H=8, W=8, C=128, row_tile=4)

    print("KERNEL_OK")
</pallas_src>

<mosaic_0001>
module attributes {stable_mosaic.version = 11 : i64} {
  func.func @_poscnn_kernel(%arg0: i32, %arg1: i32, %arg2: i32, %arg3: memref<1x8x16x128xf32, #tpu.memory_space<vmem>>, %arg4: memref<1x1x16x128xf32, #tpu.memory_space<vmem>>, %arg5: memref<1x1x16x128xf32, #tpu.memory_space<vmem>>, %arg6: memref<3x3x128xf32, #tpu.memory_space<vmem>>, %arg7: memref<1x128xf32, #tpu.memory_space<vmem>>, %arg8: memref<1x8x16x128xf32, #tpu.memory_space<vmem>>, %arg9: memref<10x18x128xf32, #tpu.memory_space<vmem>>) attributes {dimension_semantics = [#tpu.dimension_semantics<parallel>, #tpu.dimension_semantics<parallel>, #tpu.dimension_semantics<parallel>], iteration_bounds = array<i64: 2, 2, 1>, scalar_prefetch = 0 : i64, scratch_operands = 1 : i64, tpu.core_type = #tpu.core_type<tc>, window_params = [{transform_indices = @transform_0, window_bounds = array<i64: 1, 8, 16, 128>}, {transform_indices = @transform_1, window_bounds = array<i64: 1, 1, 16, 128>}, {transform_indices = @transform_2, window_bounds = array<i64: 1, 1, 16, 128>}, {transform_indices = @transform_3, window_bounds = array<i64: 3, 3, 128>}, {transform_indices = @transform_4, window_bounds = array<i64: 1, 128>}, {transform_indices = @transform_5, window_bounds = array<i64: 1, 8, 16, 128>}]} {
    %cst = arith.constant 0.000000e+00 : f32
    %0 = vector.broadcast %cst : f32 to vector<10x1x128xf32>
    %c0 = arith.constant 0 : index
    %c0_0 = arith.constant 0 : index
    %c0_1 = arith.constant 0 : index
    %1 = vector.load %arg9[%c0, %c0_0, %c0_1] : memref<10x18x128xf32, #tpu.memory_space<vmem>>, vector<10x1x128xf32>
    tpu.vector_store %arg9[%c0, %c0_0, %c0_1], %0 {strides = array<i32>} : memref<10x18x128xf32, #tpu.memory_space<vmem>>, vector<10x1x128xf32>,
    %c0_2 = arith.constant 0 : index
    %c17 = arith.constant 17 : index
    %c0_3 = arith.constant 0 : index
    %2 = vector.load %arg9[%c0_2, %c17, %c0_3] : memref<10x18x128xf32, #tpu.memory_space<vmem>>, vector<10x1x128xf32>
    tpu.vector_store %arg9[%c0_2, %c17, %c0_3], %0 {strides = array<i32>} : memref<10x18x128xf32, #tpu.memory_space<vmem>>, vector<10x1x128xf32>,
    %c0_4 = arith.constant 0 : index
    %c0_5 = arith.constant 0 : index
    %c0_6 = arith.constant 0 : index
    %c0_7 = arith.constant 0 : index
    %3 = vector.load %arg3[%c0_4, %c0_5, %c0_6, %c0_7] : memref<1x8x16x128xf32, #tpu.memory_space<vmem>>, vector<1x8x16x128xf32>
    %4 = vector.shape_cast %3 : vector<1x8x16x128xf32> to vector<8x16x128xf32>
    %c1 = arith.constant 1 : index
    %c1_8 = arith.constant 1 : index
    %c0_9 = arith.constant 0 : index
    %5 = vector.load %arg9[%c1, %c1_8, %c0_9] : memref<10x18x128xf32, #tpu.memory_space<vmem>>, vector<8x16x128xf32>
    tpu.vector_store %arg9[%c1, %c1_8, %c0_9], %4 {strides = array<i32>} : memref<10x18x128xf32, #tpu.memory_space<vmem>>, vector<8x16x128xf32>,
    %c0_i32 = arith.constant 0 : i32
    %6 = arith.cmpi sgt, %arg1, %c0_i32 : i32
    %c0_10 = arith.constant 0 : index
    %c0_11 = arith.constant 0 : index
    %c0_12 = arith.constant 0 : index
    %c0_13 = arith.constant 0 : index
    %7 = vector.load %arg4[%c0_10, %c0_11, %c0_12, %c0_13] : memref<1x1x16x128xf32, #tpu.memory_space<vmem>>, vector<1x1x16x128xf32>
    %8 = vector.shape_cast %7 : vector<1x1x16x128xf32> to vector<1x16x128xf32>
    %cst_14 = arith.constant 0.000000e+00 : f32
    %9 = vector.broadcast %cst_14 : f32 to vector<1x16x128xf32>
    %10 = arith.select %6, %8, %9 : vector<1x16x128xf32>
    %c0_15 = arith.constant 0 : index
    %c1_16 = arith.constant 1 : index
    %c0_17 = arith.constant 0 : index
    %11 = vector.load %arg9[%c0_15, %c1_16, %c0_17] : memref<10x18x128xf32, #tpu.memory_space<vmem>>, vector<1x16x128xf32>
    tpu.vector_store %arg9[%c0_15, %c1_16, %c0_17], %10 {strides = array<i32>} : memref<10x18x128xf32, #tpu.memory_space<vmem>>, vector<1x16x128xf32>,
    %c1_i32 = arith.constant 1 : i32
    %12 = arith.cmpi slt, %arg1, %c1_i32 : i32
    %c0_18 = arith.constant 0 : index
    %c0_19 = arith.constant 0 : index
    %c0_20 = arith.constant 0 : index
    %c0_21 = arith.constant 0 : index
    %13 = vector.load %arg5[%c0_18, %c0_19, %c0_20, %c0_21] : memref<1x1x16x128xf32, #tpu.memory_space<vmem>>, vector<1x1x16x128xf32>
    %14 = vector.shape_cast %13 : vector<1x1x16x128xf32> to vector<1x16x128xf32>
    %cst_22 = arith.constant 0.000000e+00 : f32
    %15 = vector.broadcast %cst_22 : f32 to vector<1x16x128xf32>
    %16 = arith.select %12, %14, %15 : vector<1x16x128xf32>
    %c9 = arith.constant 9 : index
    %c1_23 = arith.constant 1 : index
    %c0_24 = arith.constant 0 : index
    %17 = vector.load %arg9[%c9, %c1_23, %c0_24] : memref<10x18x128xf32, #tpu.memory_space<vmem>>, vector<1x16x128xf32>
    tpu.vector_store %arg9[%c9, %c1_23, %c0_24], %16 {strides = array<i32>} : memref<10x18x128xf32, #tpu.memory_space<vmem>>, vector<1x16x128xf32>,
    %c0_25 = arith.constant 0 : index
    %c0_26 = arith.constant 0 : index
    %c0_27 = arith.constant 0 : index
    %18 = vector.load %arg6[%c0_25, %c0_26, %c0_27] : memref<3x3x128xf32, #tpu.memory_space<vmem>>, vector<3x3x128xf32>
    %c0_28 = arith.constant 0 : index
    %c0_29 = arith.constant 0 : index
    %19 = vector.load %arg7[%c0_28, %c0_29] : memref<1x128xf32, #tpu.memory_space<vmem>>, vector<1x128xf32>
    %20 = vector.shape_cast %19 : vector<1x128xf32> to vector<1x1x128xf32>
    %21 = vector.extract_strided_slice %18 {offsets = [1, 1, 0], sizes = [1, 1, 128], strides = [1, 1, 1]} : vector<3x3x128xf32> to vector<1x1x128xf32>
    %22 = vector.shape_cast %21 : vector<1x1x128xf32> to vector<128xf32>
    %23 = vector.shape_cast %22 : vector<128xf32> to vector<1x1x128xf32>
    %cst_30 = arith.constant 1.000000e+00 : f32
    %24 = vector.broadcast %cst_30 : f32 to vector<1x1x128xf32>
    %25 = arith.addf %23, %24 : vector<1x1x128xf32>
    %26 = vector.broadcast %25 : vector<1x1x128xf32> to vector<8x16x128xf32>
    %27 = arith.mulf %4, %26 : vector<8x16x128xf32>
    %28 = vector.broadcast %20 : vector<1x1x128xf32> to vector<8x16x128xf32>
    %29 = arith.addf %27, %28 : vector<8x16x128xf32>
    %c0_31 = arith.constant 0 : index
    %c0_32 = arith.constant 0 : index
    %c0_33 = arith.constant 0 : index
    %30 = vector.load %arg9[%c0_31, %c0_32, %c0_33] : memref<10x18x128xf32, #tpu.memory_space<vmem>>, vector<8x16x128xf32>
    %31 = vector.extract_strided_slice %18 {offsets = [0, 0, 0], sizes = [1, 1, 128], strides = [1, 1, 1]} : vector<3x3x128xf32> to vector<1x1x128xf32>
    %32 = vector.shape_cast %31 : vector<1x1x128xf32> to vector<128xf32>
    %33 = vector.shape_cast %32 : vector<128xf32> to vector<1x1x128xf32>
    %34 = vector.broadcast %33 : vector<1x1x128xf32> to vector<8x16x128xf32>
    %35 = arith.mulf %30, %34 : vector<8x16x128xf32>
    %36 = arith.addf %29, %35 : vector<8x16x128xf32>
    %c0_34 = arith.constant 0 : index
    %c1_35 = arith.constant 1 : index
    %c0_36 = arith.constant 0 : index
    %37 = vector.load %arg9[%c0_34, %c1_35, %c0_36] : memref<10x18x128xf32, #tpu.memory_space<vmem>>, vector<8x16x128xf32>
    %38 = vector.extract_strided_slice %18 {offsets = [0, 1, 0], sizes = [1, 1, 128], strides = [1, 1, 1]} : vector<3x3x128xf32> to vector<1x1x128xf32>
    %39 = vector.shape_cast %38 : vector<1x1x128xf32> to vector<128xf32>
    %40 = vector.shape_cast %39 : vector<128xf32> to vector<1x1x128xf32>
    %41 = vector.broadcast %40 : vector<1x1x128xf32> to vector<8x16x128xf32>
    %42 = arith.mulf %37, %41 : vector<8x16x128xf32>
    %43 = arith.addf %36, %42 : vector<8x16x128xf32>
    %c0_37 = arith.constant 0 : index
    %c2 = arith.constant 2 : index
    %c0_38 = arith.constant 0 : index
    %44 = vector.load %arg9[%c0_37, %c2, %c0_38] : memref<10x18x128xf32, #tpu.memory_space<vmem>>, vector<8x16x128xf32>
    %45 = vector.extract_strided_slice %18 {offsets = [0, 2, 0], sizes = [1, 1, 128], strides = [1, 1, 1]} : vector<3x3x128xf32> to vector<1x1x128xf32>
    %46 = vector.shape_cast %45 : vector<1x1x128xf32> to vector<128xf32>
    %47 = vector.shape_cast %46 : vector<128xf32> to vector<1x1x128xf32>
    %48 = vector.broadcast %47 : vector<1x1x128xf32> to vector<8x16x128xf32>
    %49 = arith.mulf %44, %48 : vector<8x16x128xf32>
    %50 = arith.addf %43, %49 : vector<8x16x128xf32>
    %c1_39 = arith.constant 1 : index
    %c0_40 = arith.constant 0 : index
    %c0_41 = arith.constant 0 : index
    %51 = vector.load %arg9[%c1_39, %c0_40, %c0_41] : memref<10x18x128xf32, #tpu.memory_space<vmem>>, vector<8x16x128xf32>
    %52 = vector.extract_strided_slice %18 {offsets = [1, 0, 0], sizes = [1, 1, 128], strides = [1, 1, 1]} : vector<3x3x128xf32> to vector<1x1x128xf32>
    %53 = vector.shape_cast %52 : vector<1x1x128xf32> to vector<128xf32>
    %54 = vector.shape_cast %53 : vector<128xf32> to vector<1x1x128xf32>
    %55 = vector.broadcast %54 : vector<1x1x128xf32> to vector<8x16x128xf32>
    %56 = arith.mulf %51, %55 : vector<8x16x128xf32>
    %57 = arith.addf %50, %56 : vector<8x16x128xf32>
    %c1_42 = arith.constant 1 : index
    %c2_43 = arith.constant 2 : index
    %c0_44 = arith.constant 0 : index
    %58 = vector.load %arg9[%c1_42, %c2_43, %c0_44] : memref<10x18x128xf32, #tpu.memory_space<vmem>>, vector<8x16x128xf32>
    %59 = vector.extract_strided_slice %18 {offsets = [1, 2, 0], sizes = [1, 1, 128], strides = [1, 1, 1]} : vector<3x3x128xf32> to vector<1x1x128xf32>
    %60 = vector.shape_cast %59 : vector<1x1x128xf32> to vector<128xf32>
    %61 = vector.shape_cast %60 : vector<128xf32> to vector<1x1x128xf32>
    %62 = vector.broadcast %61 : vector<1x1x128xf32> to vector<8x16x128xf32>
    %63 = arith.mulf %58, %62 : vector<8x16x128xf32>
    %64 = arith.addf %57, %63 : vector<8x16x128xf32>
    %c2_45 = arith.constant 2 : index
    %c0_46 = arith.constant 0 : index
    %c0_47 = arith.constant 0 : index
    %65 = vector.load %arg9[%c2_45, %c0_46, %c0_47] : memref<10x18x128xf32, #tpu.memory_space<vmem>>, vector<8x16x128xf32>
    %66 = vector.extract_strided_slice %18 {offsets = [2, 0, 0], sizes = [1, 1, 128], strides = [1, 1, 1]} : vector<3x3x128xf32> to vector<1x1x128xf32>
    %67 = vector.shape_cast %66 : vector<1x1x128xf32> to vector<128xf32>
    %68 = vector.shape_cast %67 : vector<128xf32> to vector<1x1x128xf32>
    %69 = vector.broadcast %68 : vector<1x1x128xf32> to vector<8x16x128xf32>
    %70 = arith.mulf %65, %69 : vector<8x16x128xf32>
    %71 = arith.addf %64, %70 : vector<8x16x128xf32>
    %c2_48 = arith.constant 2 : index
    %c1_49 = arith.constant 1 : index
    %c0_50 = arith.constant 0 : index
    %72 = vector.load %arg9[%c2_48, %c1_49, %c0_50] : memref<10x18x128xf32, #tpu.memory_space<vmem>>, vector<8x16x128xf32>
    %73 = vector.extract_strided_slice %18 {offsets = [2, 1, 0], sizes = [1, 1, 128], strides = [1, 1, 1]} : vector<3x3x128xf32> to vector<1x1x128xf32>
    %74 = vector.shape_cast %73 : vector<1x1x128xf32> to vector<128xf32>
    %75 = vector.shape_cast %74 : vector<128xf32> to vector<1x1x128xf32>
    %76 = vector.broadcast %75 : vector<1x1x128xf32> to vector<8x16x128xf32>
    %77 = arith.mulf %72, %76 : vector<8x16x128xf32>
    %78 = arith.addf %71, %77 : vector<8x16x128xf32>
    %c2_51 = arith.constant 2 : index
    %c2_52 = arith.constant 2 : index
    %c0_53 = arith.constant 0 : index
    %79 = vector.load %arg9[%c2_51, %c2_52, %c0_53] : memref<10x18x128xf32, #tpu.memory_space<vmem>>, vector<8x16x128xf32>
    %80 = vector.extract_strided_slice %18 {offsets = [2, 2, 0], sizes = [1, 1, 128], strides = [1, 1, 1]} : vector<3x3x128xf32> to vector<1x1x128xf32>
    %81 = vector.shape_cast %80 : vector<1x1x128xf32> to vector<128xf32>
    %82 = vector.shape_cast %81 : vector<128xf32> to vector<1x1x128xf32>
    %83 = vector.broadcast %82 : vector<1x1x128xf32> to vector<8x16x128xf32>
    %84 = arith.mulf %79, %83 : vector<8x16x128xf32>
    %85 = arith.addf %78, %84 : vector<8x16x128xf32>
    %c0_54 = arith.constant 0 : index
    %c0_55 = arith.constant 0 : index
    %c0_56 = arith.constant 0 : index
    %c0_57 = arith.constant 0 : index
    %86 = vector.load %arg8[%c0_54, %c0_55, %c0_56, %c0_57] : memref<1x8x16x128xf32, #tpu.memory_space<vmem>>, vector<1x8x16x128xf32>
    %87 = vector.shape_cast %86 : vector<1x8x16x128xf32> to vector<8x16x128xf32>
    %88 = vector.shape_cast %85 : vector<8x16x128xf32> to vector<1x8x16x128xf32>
    tpu.vector_store %arg8[%c0_54, %c0_55, %c0_56, %c0_57], %88 {strides = array<i32>} : memref<1x8x16x128xf32, #tpu.memory_space<vmem>>, vector<1x8x16x128xf32>,
    return
  }
  func.func @transform_0(%arg0: i32, %arg1: i32, %arg2: i32) -> (i32, i32, i32, i32) {
    %c0_i32 = arith.constant 0 : i32
    %c0_i32_0 = arith.constant 0 : i32
    return %arg0, %arg1, %c0_i32, %arg2 : i32, i32, i32, i32
  }
  func.func @transform_1(%arg0: i32, %arg1: i32, %arg2: i32) -> (i32, i32, i32, i32) {
    %c8_i32 = arith.constant 8 : i32
    %0 = arith.muli %arg1, %c8_i32 : i32
    %c1_i32 = arith.constant 1 : i32
    %1 = arith.subi %0, %c1_i32 : i32
    %c0_i32 = arith.constant 0 : i32
    %2 = arith.maxsi %1, %c0_i32 : i32
    %c0_i32_0 = arith.constant 0 : i32
    %c0_i32_1 = arith.constant 0 : i32
    return %arg0, %2, %c0_i32_0, %arg2 : i32, i32, i32, i32
  }
  func.func @transform_2(%arg0: i32, %arg1: i32, %arg2: i32) -> (i32, i32, i32, i32) {
    %c8_i32 = arith.constant 8 : i32
    %0 = arith.muli %arg1, %c8_i32 : i32
    %c8_i32_0 = arith.constant 8 : i32
    %1 = arith.addi %0, %c8_i32_0 : i32
    %c15_i32 = arith.constant 15 : i32
    %2 = arith.minsi %1, %c15_i32 : i32
    %c0_i32 = arith.constant 0 : i32
    %c0_i32_1 = arith.constant 0 : i32
    return %arg0, %2, %c0_i32, %arg2 : i32, i32, i32, i32
  }
  func.func @transform_3(%arg0: i32, %arg1: i32, %arg2: i32) -> (i32, i32, i32) {
    %c0_i32 = arith.constant 0 : i32
    %c0_i32_0 = arith.constant 0 : i32
    %c0_i32_1 = arith.constant 0 : i32
    return %c0_i32, %c0_i32_0, %arg2 : i32, i32, i32
  }
  func.func @transform_4(%arg0: i32, %arg1: i32, %arg2: i32) -> (i32, i32) {
    %c0_i32 = arith.constant 0 : i32
    %c0_i32_0 = arith.constant 0 : i32
    return %c0_i32, %arg2 : i32, i32
  }
  func.func @transform_5(%arg0: i32, %arg1: i32, %arg2: i32) -> (i32, i32, i32, i32) {
    %c0_i32 = arith.constant 0 : i32
    %c0_i32_0 = arith.constant 0 : i32
    return %arg0, %arg1, %c0_i32, %arg2 : i32, i32, i32, i32
  }
}

</mosaic_0001>

<bundles_post_ra>
// kernel: tpu_custom_call.1
= control target key start
LH: loop header
LB: loop body
LE: loop exit
PB: predicated region body
PF: predicated region fallthrough
CT: control target
= control target key end

     0   :  { %s2603_s0 = inlined_call_operand.hbm [shape: f32[2,16,16,128], index: 0, kind: input, shape index: {}]   ;;  %s2604_s1 = inlined_call_operand.hbm [shape: f32[2,16,16,128], index: 1, kind: input, shape index: {}]   ;;  %s2605_s2 = inlined_call_operand.hbm [shape: f32[2,16,16,128], index: 2, kind: input, shape index: {}]   ;;  %s2606_s3 = inlined_call_operand.hbm [shape: f32[3,3,128], index: 3, kind: input, shape index: {}]   ;;  %s2607_s4 = inlined_call_operand.vmem [shape: f32[1,128], index: 4, kind: input, shape index: {}]   ;;  %s2608_s5 = inlined_call_operand.hbm [shape: f32[2,16,16,128], index: 5, kind: output, shape index: {}]  }
   0x1   :  { %2650 = sst [smem:[#allocation52_spill]] %s2603_s0 }
   0x2   :  { %2651 = sst [smem:[#allocation53_spill]] %s2604_s1 }
   0x3   :  { %2652 = sst [smem:[#allocation54_spill]] %s2605_s2 }
   0x4   :  { %2653 = sst [smem:[#allocation55_spill]] %s2606_s3 }
   0x5   :  { %2654 = sst [smem:[#allocation56_spill]] %s2607_s4 }
   0x6   :  { %2655 = sst [smem:[#allocation57_spill]] %s2608_s5 }
   0x7   :  { %10 = vsyncpa [#allocation4], 0 }
   0x8   :  { %12 = vsyncpa [#allocation4 + $0x1], 0 }
   0x9   :  { %13 = vsyncpa [#allocation7], 0 }
   0xa   :  { %15 = vsyncpa [#allocation7 + $0x1], 0 }
   0xb   :  { %16 = vsyncpa [#allocation10], 0 }
   0xc   :  { %17 = vsyncpa [#allocation5], 0 }
   0xd   :  { %19 = vsyncpa [#allocation5 + $0x1], 0  ;;  %s1697_s18 = smov 0   ;;  %s1699_s19 = smov 0  }
   0xe   :  { %s1701_s20 = smov 0   ;;  %s1703_s21 = smov 0  }
   0xf   :  { %s1705_s22 = smov 0   ;;  %s1707_s23 = smov 0  }
  0x10   :  { %s1709_s24 = smov 0   ;;  %s1711_s25 = smov 0  }
  0x11   :  { %s1713_s26 = smov 0   ;;  %s1715_s27 = smov 0  }
  0x12   :  { %s1717_s28 = smov 0   ;;  %s1719_s29 = smov 0  }
  0x13   :  { %s1721_s30 = smov 0   ;;  %s1723_s6 = smov 0  }
  0x14 LB: > { %2656 = sst [smem:[#allocation17_spill]] %s1601_s18  ;;  %s40_s7 = sadd.s32 1, %s1645_s29  ;;  %s1653_s6 = sphi %s1723_s6, %s25_s6   ;;  %s1649_s30 = sphi %s1721_s30, %s2761_s30   ;;  %s1645_s29 = sphi %s1719_s29, %s2760_s29   ;;  %s1641_s28 = sphi %s1717_s28, %s2766_s28   ;;  %s1637_s27 = sphi %s1715_s27, %s2758_s27   ;;  %s1633_s26 = sphi %s1713_s26, %s2757_s26   ;;  %s1629_s25 = sphi %s1711_s25, %s2765_s25   ;;  %s1625_s24 = sphi %s1709_s24, %s2764_s24   ;;  %s1621_s23 = sphi %s1707_s23, %s2755_s23   ;;  %s1617_s22 = sphi %s1705_s22, %s2763_s22   ;;  %s1613_s21 = sphi %s1703_s21, %s2762_s21   ;;  %s1609_s20 = sphi %s1701_s20, %s2782_s20   ;;  %s1605_s19 = sphi %s1699_s19, %s2753_s19   ;;  %s1601_s18 = sphi %s1697_s18, %s2752_s18  }
  0x15   : > { %2657 = sst [smem:[#allocation18_spill]] %s1605_s19  ;;  %s44_s8 = sadd.s32 1, %s1649_s30 }
  0x16   : > { %2658 = sst [smem:[#allocation19_spill]] %s1609_s20  ;;  %p42_p0 = scmp.ge.s32.totalorder %s40_s7, 2 }
  0x17   : > { %2659 = sst [smem:[#allocation20_spill]] %s1621_s23  ;;  %p2619_p1 = scmp.eq.s32.totalorder %s1653_s6, 0 }
  0x18   : > { %2660 = sst [smem:[#allocation21_spill]] %s1633_s26  ;;  %s1179_s9 = sshll.u32 %s1645_s29, 3 }
  0x19   : > { %2661 = sst [smem:[#allocation22_spill]] %s1637_s27  ;;  %s93_s10 = sadd.s32 1, %s1621_s23 }
  0x1a   : > { %2662 = sst [smem:[#allocation23_spill]] %s1641_s28  ;;  %s2768_s7 = smov (%p42_p0, %s40_s7), 0 }
  0x1b   : > { %2663 = sst [smem:[#allocation24_spill]] %s1645_s29  ;;  %s2770_s8 = smov (!%p42_p0, %s44_s8), %s1649_s30 }
  0x1c   : > { %2664 = sst [smem:[#allocation25_spill]] %s1649_s30  ;;  %s49_s11 = ssub.s32 %s1645_s29, %s2768_s7 }
  0x1d   : > { %2665 = sst [smem:[#allocation26_spill]] %s2768_s7  ;;  %s1180_s12 = sadd.s32 4294967295, %s1179_s9 }
  0x1e   : > { %p46_p2 = scmp.ge.s32.totalorder %s2770_s8, 2  ;;  %p80_p3 = scmp.gt.s32.totalorder %s1180_s12, 0 }
  0x1f   : > { %s1181_s13 = sshll.u32 %s2768_s7, 3  ;;  %p100_p4 = scmp.ne.s32.totalorder %s1621_s23, %s1617_s22 }
  0x20   : > { %s2772_s8 = smov (%p46_p2, %s2770_s8), 0  ;;  %s2774_s12 = smov (!%p80_p3, %s1180_s12), 0 }
  0x21   : > { %2666 = sst [smem:[#allocation27_spill]] %s2772_s8  ;;  %s1784_s14 = ssub.s32 %s1649_s30, %s2772_s8 }
  0x22   : > { %2667 = sst [smem:[#allocation28_spill]] %s1784_s14  ;;  %s1182_s15 = sadd.s32 4294967295, %s1181_s13 }
  0x23   : > { %s1787_s16 = sor.u32 %s49_s11, %s1784_s14  ;;  %p84_p5 = scmp.gt.s32.totalorder %s1182_s15, 0 }
  0x24   : > { %p1792_p7 = por %p100_p4, %p2619_p1  ;;  %p106_p8 = scmp.ne.s32.totalorder %s1617_s22, %s1613_s21 }
  0x25   : > { %s2776_s15 = smov (!%p84_p5, %s1182_s15), 0  ;;  %s1798_s8 = sadd.s32 8, %s1179_s9 }
  0x26   : > { %2669 = sst [smem:[#allocation29_spill]] %s1798_s8  ;;  %s87_s7 = ssub.s32 %s2774_s12, %s2776_s15 }
  0x27   : > { %s88_s5 = sor.u32 %s87_s7, %s1784_s14  ;;  %s1802_s11 = sadd.s32 8, %s1181_s13 }
  0x28   : > { %p91_p10 = scmp.eq.s32.totalorder %s88_s5, 0  ;;  %p2618_p12 = scmp.lt.s32.totalorder %s1653_s6, 4 }
  0x29   : > { %s1810_s4 = sshll.u32 %s1649_s30, 5  ;;  %s296_s27 = sand.u32 1, %s1653_s6  }
  0x2a   : > { %s1807_s28 = scalar_select %p91_p10, %s1621_s23, %s93_s10  }
  0x2b   : > { %s298_s9 = sand.u32 1, %s1621_s23   ;;  %s1197_s18 = sshll.u32 %s2774_s12, 1 }
  0x2c   : > { %2670 = sst [smem:[#allocation30_spill]] %s1807_s28  ;;  %s1194_s2 = sshll.u32 %s298_s9, 4 }
  0x2d   : > { %s311_s15 = sadd.s32 %s1197_s18, %s1810_s4  ;;  %s300_s7 = scalar_lea.vmem [#allocation6], %s1194_s2 }
  0x2e   : > { %s1199_s19 = sshll.u32 %s311_s15, 7  ;;  %s314_s13 = sshll.u32 %s300_s7, 4  ;;  %s315_s13 = int_to_ptr.vmem [resolvable:$true] %s314_s13 }
  0x2f   : > { %s2671_s1 = sld [smem:[#allocation53_spill]]  ;;  %p1822_p13 = pnand %p2618_p12, %p1792_p7 }
  0x30   : > { %s1826_s10 = scalar_lea.sflag [#allocation7], %s296_s27  ;;  %s1400_s18 = scalar_lea.vmem %s315_s13, 256 }
  0x31   : > { %p1389_p0 = pneg %p1822_p13  ;;  %p1401_p2 = scmp.ne.s32.totalorder %s315_s13, %s1400_s18 }
  0x32   : > { %s1655_s2 = smov [#allocation6]  }
  0x33   : > { %p1403_p3 = pnand %p1401_p2, %p1389_p0  ;;  %s1405_s12 = sshll.u32 %s1655_s2, 4  ;;  %s1406_s12 = int_to_ptr.vmem [resolvable:$false] %s1405_s12 }
  0x34   : > { %p1408_p5 = scmp.lt.s32.totalorder %s315_s13, %s1406_s12 }
  0x35   : > { %s313_s20 = scalar_lea.hbm %s2671_s1, %s1199_s19  ;;  %p1404_p4 = pneg %p1403_p3 }
  0x36   : > { %s1407_s19 = scalar_lea.vmem %s1406_s12, 512 }
  0x37   : > { %p1409_p10 = scmp.lt.s32.totalorder %s1407_s19, %s1400_s18 }
  0x39   : > { %p1410_p11 = por %p1409_p10, %p1408_p5 }
  0x3b   : > { %p1411_p7 = pnand %p1410_p11, %p1404_p4 }
  0x3d   : > { %1414 = shalt.err (!%p1411_p7)
}
  0x3e   : > { %s2620_s8 = smov 128   ;;  %s2622_s27 = smov 8  }
  0x3f   : > { %1243 = dma.hbm_to_vmem [thread:$0]  (!%p1822_p13), %s313_s20, 256, %s315_s13, %s1826_s10, %s2620_s8, %s2620_s8, %s2622_s27  }
  0x40   : > { %s1837_s14 = sadd.s32 4294967295, %s1653_s6   ;;  %p1185_p11 = scmp.ge.s32.totalorder %s1653_s6, 1 }
  0x41   : > { %p2625_p0 = scmp.eq.s32.totalorder %s1837_s14, 0  ;;  %p237_p3 = scmp.lt.s32.totalorder %s1653_s6, 5 }
  0x42   : > { %s1658_s20 = smov [#allocation9]  }
  0x43   : > { %p1848_p4 = por %p106_p8, %p2625_p0  ;;  %p1852_p5 = pnand %p1185_p11, %p237_p3 }
  0x44   : > { %s251_s15 = sshll.u32 %s1658_s20, 4  ;;  %s252_s15 = int_to_ptr.vmem [resolvable:$true] %s251_s15 }
  0x45   : > { %p1233_p13 = pneg %p1852_p5  ;;  %s1426_s7 = scalar_lea.vmem %s252_s15, 192 }
  0x46   : > { %p1427_p9 = scmp.ne.s32.totalorder %s252_s15, %s1426_s7  ;;  %p1434_p2 = scmp.lt.s32.totalorder %s252_s15, %s252_s15 }
  0x47   : > { %p1234_p10 = pnand %p1233_p13, %p2625_p0  ;;  %p1435_p1 = scmp.lt.s32.totalorder %s1426_s7, %s1426_s7 }
  0x49   : > { %p1417_p7 = pneg %p1234_p10  ;;  %p1436_p6 = por %p1435_p1, %p1434_p2 }
  0x4b   : > { %p1429_p12 = pnand %p1427_p9, %p1417_p7 }
  0x4d   : > { %p1430_p8 = pneg %p1429_p12 }
  0x4f   : > { %p1437_p11 = pnand %p1436_p6, %p1430_p8 }
  0x51   : > { %1440 = shalt.err (!%p1437_p11)
}
  0x52   : > { %s1659_s21 = smov 64   ;;  %s1660_s13 = smov 4  }
  0x53   : > { %s2675_s3 = sld [smem:[#allocation55_spill]]  ;;  %s1178_s2 = sadd.s32 4294967294, %s1653_s6  }
  0x54   : > { %s55_s12 = sadd.s32 1, %s1633_s26  ;;  %p2676_p1 = scmp.eq.s32.totalorder %s1787_s16, 0 }
  0x55   : > { %p62_p6 = scmp.ne.s32.totalorder %s1633_s26, %s1629_s25  ;;  %p68_p9 = scmp.ne.s32.totalorder %s1629_s25, %s1625_s24 }
  0x56   : > { %s1868_s19 = scalar_select %p2676_p1, %s1633_s26, %s55_s12  }
  0x57   : > { %p230_p12 = scmp.eq.s32.totalorder %s1178_s2, 3  ;;  %s271_s20 = sand.u32 1, %s1633_s26  }
  0x58   : > { %2677 = sst [smem:[#allocation31_spill]] %s1868_s19  ;;  %p2678_p2 = scmp.eq.s32.totalorder %s1653_s6, 0 }
  0x59   : > { %1236 = dma.hbm_to_vmem [thread:$0]  (!%p1234_p10), %s2675_s3, 192, %s252_s15, [#allocation10], %s1659_s21, %s1659_s21, %s1660_s13  }
  0x5a   : > { %p64_p3 = por %p2678_p2, %p62_p6  ;;  %p1879_p13 = por %p2625_p0, %p68_p9 }
  0x5b   : > { %p2680_p7 = scmp.eq.s32.totalorder %s1837_s14, 3  ;;  %p1889_p10 = por %p230_p12, %p68_p9 }
  0x5c   : > { %s1189_s21 = sshll.u32 %s271_s20, 7  ;;  %s1219_s13 = sshll.u32 %s1645_s29, 4 }
  0x5d   : > { %p1885_p8 = por %p2680_p7, %p62_p6  ;;  %s283_s5 = sadd.s32 %s1219_s13, %s1810_s4 }
  0x5e   : > { %s2682_s16 = scalar_select %p1889_p10, 1, 0 }
  0x5f   : > { %s2681_s15 = scalar_select %p1885_p8, 1, 0 }
  0x60   : > { %s275_s18 = scalar_lea.vmem [#allocation3], %s1189_s21  ;;  %s1193_s12 = sshll.u32 %s283_s5, 7 }
  0x61   : > { %s286_s2 = sshll.u32 %s275_s18, 4  ;;  %s2683_s0 = sld [smem:[#allocation52_spill]]  ;;  %s287_s2 = int_to_ptr.vmem [resolvable:$true] %s286_s2 }
  0x62   : > { %p2684_p11 = scmp.lt.s32.totalorder %s1653_s6, 4  ;;  %s272_s30 = scalar_lea.sflag [#allocation4], %s271_s20 }
  0x63   : > { %s1454_s19 = scalar_lea.vmem %s287_s2, 2048  ;;  %s1661_s21 = smov [#allocation3]  }
  0x64   : > { %p1900_p1 = pnand %p2684_p11, %p64_p3  ;;  %p1455_p9 = scmp.ne.s32.totalorder %s287_s2, %s1454_s19 }
  0x65   : > { %s1459_s13 = sshll.u32 %s1661_s21, 4  ;;  %s1460_s13 = int_to_ptr.vmem [resolvable:$false] %s1459_s13 }
  0x66   : > { %p1443_p6 = pneg %p1900_p1  ;;  %s1461_s5 = scalar_lea.vmem %s1460_s13, 4096 }
  0x67   : > { %s285_s1 = scalar_lea.hbm %s2683_s0, %s1193_s12  ;;  %p1462_p7 = scmp.lt.s32.totalorder %s287_s2, %s1460_s13 }
  0x68   : > { %p1457_p12 = pnand %p1455_p9, %p1443_p6  ;;  %p1463_p0 = scmp.lt.s32.totalorder %s1461_s5, %s1454_s19 }
  0x6a   : > { %p1458_p2 = pneg %p1457_p12  ;;  %p1464_p10 = por %p1463_p0, %p1462_p7 }
  0x6c   : > { %p1465_p8 = pnand %p1464_p10, %p1458_p2 }
  0x6e   : > { %1468 = shalt.err (!%p1465_p8)
}
  0x6f   : > { %s2686_s8 = smov 8   ;;  %s2687_s27 = smov 128  }
  0x70   : > { %s2688_s20 = sld [smem:[#allocation19_spill]]  ;;  %p2694_p3 = scmp.lt.s32.totalorder %s1802_s11, 15 }
  0x71   : > { %s2689_s18 = sld [smem:[#allocation29_spill]]  ;;  %p2695_p11 = scmp.eq.s32.totalorder %s1653_s6, 0 }
  0x72   : > { %s2690_s12 = sld [smem:[#allocation18_spill]]  ;;  %s2780_s11 = smov (!%p2694_p3, %s1802_s11), 15 }
  0x73   : > { %s2691_s21 = sld [smem:[#allocation17_spill]]  ;;  %p2696_p12 = scmp.eq.s32.totalorder %s1837_s14, 0 }
  0x74   : > { %s2692_s13 = sld [smem:[#allocation28_spill]] }
  0x75   : > { %1240 = dma.hbm_to_vmem [thread:$0]  (!%p1900_p1), %s285_s1, 2048, %s287_s2, %s272_s30, %s2687_s27, %s2687_s27, %s2686_s8  }
  0x76   : > { %s131_s3 = sadd.s32 1, %s2688_s20  ;;  %s326_s5 = sand.u32 1, %s2688_s20  }
  0x77   : > { %p2693_p0 = scmp.lt.s32.totalorder %s2689_s18, 15  ;;  %s1200_s1 = sshll.u32 %s326_s5, 4 }
  0x78   : > { %p138_p8 = scmp.ne.s32.totalorder %s2688_s20, %s2690_s12  ;;  %s328_s28 = scalar_lea.vmem [#allocation8], %s1200_s1 }
  0x79   : > { %s2778_s18 = smov (!%p2693_p0, %s2689_s18), 15  ;;  %p144_p10 = scmp.ne.s32.totalorder %s2690_s12, %s2691_s21 }
  0x7a   : > { %s125_s19 = ssub.s32 %s2778_s18, %s2780_s11  ;;  %p140_p6 = por %p138_p8, %p2695_p11 }
  0x7b   : > { %s126_s0 = sor.u32 %s125_s19, %s2692_s13  ;;  %p1928_p2 = por %p144_p10, %p2696_p12 }
  0x7c   : > { %p129_p9 = scmp.eq.s32.totalorder %s126_s0, 0  ;;  %s1202_s30 = sshll.u32 %s2778_s18, 1 }
  0x7d   : > { %s2697_s29 = scalar_select %p1928_p2, 1, 0 }
  0x7e   : > { %s2782_s20 = smov (!%p129_p9, %s2688_s20), %s131_s3  ;;  %s339_s2 = sadd.s32 %s1202_s30, %s1810_s4 }
  0x7f   : > { %s1204_s26 = sshll.u32 %s339_s2, 7  ;;  %s342_s12 = sshll.u32 %s328_s28, 4  ;;  %s343_s12 = int_to_ptr.vmem [resolvable:$true] %s342_s12 }
  0x80   : > { %s2698_s23 = sld [smem:[#allocation54_spill]]  ;;  %p2699_p1 = scmp.lt.s32.totalorder %s1653_s6, 4 }
  0x81   : > { %s1482_s18 = scalar_lea.vmem %s343_s12, 256  ;;  %s1662_s4 = smov [#allocation8]  }
  0x82   : > { %p1941_p7 = pnand %p2699_p1, %p140_p6  ;;  %p1483_p3 = scmp.ne.s32.totalorder %s343_s12, %s1482_s18 }
  0x83   : > { %s1487_s3 = sshll.u32 %s1662_s4, 4  ;;  %s1488_s3 = int_to_ptr.vmem [resolvable:$false] %s1487_s3 }
  0x84   : > { %p1471_p0 = pneg %p1941_p7  ;;  %s1489_s28 = scalar_lea.vmem %s1488_s3, 512 }
  0x85   : > { %p1490_p11 = scmp.lt.s32.totalorder %s343_s12, %s1488_s3  ;;  %p1491_p9 = scmp.lt.s32.totalorder %s1489_s28, %s1482_s18 }
  0x86   : > { %s341_s13 = scalar_lea.hbm %s2698_s23, %s1204_s26  ;;  %p1485_p8 = pnand %p1483_p3, %p1471_p0 }
  0x87   : > { %p1492_p12 = por %p1491_p9, %p1490_p11 }
  0x88   : > { %p1486_p10 = pneg %p1485_p8 }
  0x8a   : > { %p1493_p2 = pnand %p1492_p12, %p1486_p10 }
  0x8c   : > { %1496 = shalt.err (!%p1493_p2)
}
  0x8d   : > { %1246 = dma.hbm_to_vmem [thread:$0]  (!%p1941_p7), %s341_s13, 256, %s343_s12, %s1826_s10, %s2687_s27, %s2687_s27, %s2686_s8  }
  0x8e   : > { %354 = sbr.rel (%p1852_p5) target bundleno = 282 (0x11a), region = 40 }
  0x93   : > { %s1956_s23 = sand.u32 1, %s1629_s25  }
  0x94   : > { %s1206_s26 = sshll.u32 %s1956_s23, 7  ;;  %s357_s19 = scalar_lea.sflag [#allocation4], %s1956_s23 }
  0x95   : > { %s1962_s5 = scalar_lea.vmem [#allocation3], %s1206_s26 }
  0x96   : > { %1580 = dma.done.wait (%p1879_p13), %s357_s19, 2048  }
  0x97   : > { %1582 = vsyncadd (%p1879_p13), %s357_s19, 4294965248  ;;  %s365_s10 = sand.u32 1, %s1837_s14   ;;  %s367_s9 = sand.u32 1, %s1617_s22  }
  0x98   : > { %s1970_s8 = sshll.u32 %s367_s9, 4  ;;  %s366_s27 = scalar_lea.sflag [#allocation7], %s365_s10 }
  0x99   : > { %s369_s1 = scalar_lea.vmem [#allocation6], %s1970_s8 }
  0x9a   : > { %1584 = dma.done.wait (%p1848_p4), %s366_s27, 256  }
  0x9b   : > { %1586 = vsyncadd (%p1848_p4), %s366_s27, 4294967040  ;;  %s2701_s30 = sld [smem:[#allocation18_spill]]  ;;  %p2702_p5 = scmp.ne.s32.totalorder %s2697_s29, 0 }
  0xa1   : > { %s376_s2 = sand.u32 1, %s2701_s30  }
  0xa2   : > { %s1978_s7 = sshll.u32 %s376_s2, 4 }
  0xa3   : > { %s378_s12 = scalar_lea.vmem [#allocation8], %s1978_s7 }
  0xa4   : > { %1588 = dma.done.wait (%p2702_p5), %s366_s27, 256  }
  0xa5   : > { %1590 = vsyncadd (%p2702_p5), %s366_s27, 4294967040  ;;  %p2703_p13 = scmp.eq.s32.totalorder %s1837_s14, 0 }
  0xa7   : > { %1592 = dma.done.wait (%p2703_p13), [#allocation10], 192   ;;  %p2704_p6 = pmov %p2703_p13 }
  0xa8   : > { %s2705_s17 = sld [smem:[#allocation22_spill]]  ;;  %v514_v0 = vlaneseq  ;;  %v1663_v1 = vmov 0.0   ;;  %v455_v5 = vld [vmem:[%s1962_s5] sm:$0xff]  ;;  %v456_v9 = vld [vmem:[%s1962_s5 + $0x8] sm:$0xff]  ;;  %v2004_v10 = vld [vmem:[%s1962_s5 + $0x10] sm:$0xff]  ;;  %s2374_s0 = scalar_lea.vmem [#allocation11], %s1206_s26 }
  0xa9   : > { %1594 = vsyncadd (%p2704_p6), [#allocation10], 4294967104  ;;  %436 = vst [vmem:[#allocation2 + $0x18] sm:$0x1] %v1663_v1  ;;  %v510_v6 = vld [vmem:[#allocation9 + $0x4] sm:$0x7] }
  0xaa   : > { %435 = vst [vmem:[#allocation2] sm:$0x1] %v1663_v1  ;;  %437 = vst [vmem:[#allocation2 + $0x30] sm:$0x1] %v1663_v1  ;;  %v515_v2 = vshrl.u32 %v514_v0, 7  ;;  %v513_v8 = vadd.f32 1.0, %v510_v6 }
  0xab   : > { %438 = vst [vmem:[#allocation2 + $0x48] sm:$0x1] %v1663_v1  ;;  %439 = vst [vmem:[#allocation2 + $0x60] sm:$0x1] %v1663_v1  ;;  %v509_v11 = vld [vmem:[#allocation9] sm:$0x7] }
  0xac   : > { %440 = vst [vmem:[#allocation2 + $0x78] sm:$0x1] %v1663_v1  ;;  %441 = vst [vmem:[#allocation2 + $0x90] sm:$0x1] %v1663_v1  ;;  %v1991_v3 = vsub.s32 1, %v515_v2  ;;  %v1993_v4 = vsub.s32 0, %v515_v2 }
  0xad   : > { %442 = vst [vmem:[#allocation2 + $0xa8] sm:$0x1] %v1663_v1  ;;  %443 = vst [vmem:[#allocation2 + $0xc0] sm:$0x1] %v1663_v1  ;;  %v1996_v7 = vsub.s32 2, %v515_v2  ;;  %s2707_s11 = sld [smem:[#allocation56_spill]] }
  0xae   : > { %p488_p4 = scmp.gt.s32.totalorder %s2705_s17, 0  ;;  %p498_p2 = scmp.lt.s32.totalorder %s2705_s17, 1  ;;  %444 = vst [vmem:[#allocation2 + $0xd8] sm:$0x1] %v1663_v1  ;;  %445 = vst [vmem:[#allocation2 + $0x11] sm:$0x1] %v1663_v1  ;;  %v2013_v13 = vrot.slane %v509_v11, %v1991_v3  ;;  %v2025_v17 = vrot.slane %v513_v8, %v1991_v3  ;;  %v2044_v21 = vrot.slane %v510_v6, %v1993_v4 }
  0xaf   : > { %446 = vst [vmem:[#allocation2 + $0x29] sm:$0x1] %v1663_v1  ;;  %447 = vst [vmem:[#allocation2 + $0x41] sm:$0x1] %v1663_v1  ;;  %v2016_v14 = vld [vmem:[%s1962_s5 + $0x18] sm:$0xff]  ;;  %v2019_v15 = vld [vmem:[%s1962_s5 + $0x20] sm:$0xff]  ;;  %v2047_v22 = vrot.slane %v510_v6, %v1996_v7  ;;  %v2050_v23 = vrot.slane %v509_v11, %v1993_v4  ;;  %v2053_v24 = vrot.slane %v509_v11, %v1996_v7 }
  0xb0   : > { %448 = vst [vmem:[#allocation2 + $0x59] sm:$0x1] %v1663_v1  ;;  %449 = vst [vmem:[#allocation2 + $0x71] sm:$0x1] %v1663_v1  ;;  %s2000_s29 = scalar_select %p488_p4, 255, 0  ;;  %v518_v28 = vmul.f32 %v2025_v17, %v455_v5  ;;  %v520_v29 = vmul.f32 %v2025_v17, %v2004_v10  ;;  %v630_v30 = vmul.f32 %v2013_v13, %v455_v5 }
  0xb1   : > { %450 = vst [vmem:[#allocation2 + $0x89] sm:$0x1] %v1663_v1  ;;  %451 = vst [vmem:[#allocation2 + $0xa1] sm:$0x1] %v1663_v1  ;;  %v2022_v16 = vld [vmem:[%s1962_s5 + $0x28] sm:$0xff]  ;;  %v2031_v18 = vld [vmem:[%s1962_s5 + $0x30] sm:$0xff]  ;;  %v521_v31 = vmul.f32 %v2025_v17, %v2016_v14  ;;  %v2088_v35 = vmul.f32 %v2013_v13, %v456_v9  ;;  %v522_v36 = vmul.f32 %v2025_v17, %v2019_v15 }
  0xb2   : > { %452 = vst [vmem:[#allocation2 + $0xb9] sm:$0x1] %v1663_v1  ;;  %453 = vst [vmem:[#allocation2 + $0xd1] sm:$0x1] %v1663_v1  ;;  %v2034_v19 = vld [vmem:[%s1962_s5 + $0x38] sm:$0xff]  ;;  %v2037_v20 = vld [vmem:[%s1962_s5 + $0x40] sm:$0xff]  ;;  %v523_v37 = vmul.f32 %v2025_v17, %v2022_v16  ;;  %v524_v38 = vmul.f32 %v2025_v17, %v2031_v18  ;;  %v2111_v42 = vmul.f32 %v2025_v17, %v456_v9 }
  0xb3   : > { %454 = vst [vmem:[#allocation2 + $0xe9] sm:$0x1] %v1663_v1  ;;  %472 = vst [vmem:[#allocation2 + $0x19] sm:$0xff] %v455_v5  ;;  %v2009_v12 = vld [vmem:[%s2707_s11] ss:$0 sm:$0xff]  ;;  %v2059_v25 = vld [vmem:[%s1962_s5 + $0x48] sm:$0xff]  ;;  %v632_v44 = vmul.f32 %v2013_v13, %v2004_v10  ;;  %v633_v45 = vmul.f32 %v2013_v13, %v2016_v14  ;;  %v634_v52 = vmul.f32 %v2013_v13, %v2019_v15 }
  0xb4   : > { %2706 = vst [vmem:[#allocation32_spill] sm:$0xff] %v2004_v10  ;;  %473 = vst [vmem:[#allocation2 + $0x21] sm:$0xff] %v456_v9  ;;  %s2041_s13 = scalar_select %p498_p2, 255, 0  ;;  %v2062_v26 = vld [vmem:[%s1962_s5 + $0x50] sm:$0xff]  ;;  %v2065_v27 = vld [vmem:[%s1962_s5 + $0x58] sm:$0xff]  ;;  %v542_v43 = vadd.f32 %v2009_v12, %v520_v29  ;;  %v2132_v48 = vadd.f32 %v2009_v12, %v518_v28  ;;  %v543_v50 = vadd.f32 %v2009_v12, %v521_v31 }
  0xb5   : > { %474 = vst [vmem:[#allocation2 + $0x31] sm:$0xff] %v2004_v10  ;;  %2708 = vst [vmem:[#allocation33_spill] sm:$0xff] %v2016_v14  ;;  %v2077_v32 = vld [vmem:[%s1962_s5 + $0x60] sm:$0xff]  ;;  %v2080_v33 = vld [vmem:[%s1962_s5 + $0x68] sm:$0xff]  ;;  %v544_v51 = vadd.f32 %v2009_v12, %v522_v36  ;;  %v545_v57 = vadd.f32 %v2009_v12, %v523_v37  ;;  %v546_v58 = vadd.f32 %v2009_v12, %v524_v38  ;;  %s2740_s18 = sld [smem:[#allocation23_spill]]  ;;  %s1220_s4 = sshll.u32 %s2705_s17, 4 }
  0xb6   : > { %475 = vst [vmem:[#allocation2 + $0x39] sm:$0xff] %v2016_v14  ;;  %476 = vst [vmem:[#allocation2 + $0x49] sm:$0xff] %v2019_v15  ;;  %v2085_v34 = vld [vmem:[%s369_s1] sm:%s2000_s29]  ;;  %v2102_v39 = vld [vmem:[%s369_s1 + $0x8] sm:%s2000_s29]  ;;  %v525_v59 = vmul.f32 %v2025_v17, %v2034_v19  ;;  %v635_v1 = vmul.f32 %v2013_v13, %v2022_v16  ;;  %v526_v2 = vmul.f32 %v2025_v17, %v2037_v20  ;;  %s1007_s19 = sshll.u32 %s2374_s0, 4  ;;  %s2748_s9 = sld [smem:[#allocation57_spill]]  ;;  %s2525_s19 = int_to_ptr.vmem [resolvable:$true] %s1007_s19 }
  0xb7   : > { %477 = vst [vmem:[#allocation2 + $0x51] sm:$0xff] %v2022_v16  ;;  %2709 = vst [vmem:[#allocation34_spill] sm:$0xff] %v2050_v23  ;;  %v2105_v40 = vld [vmem:[%s1962_s5 + $0x70] sm:$0xff]  ;;  %v2108_v41 = vld [vmem:[%s1962_s5 + $0x78] sm:$0xff]  ;;  %v636_v11 = vmul.f32 %v2013_v13, %v2031_v18  ;;  %s990_s27 = scalar_lea.sflag [#allocation5], %s1956_s23  ;;  %s1497_s1 = scalar_lea.vmem %s2525_s19, 2048 }
  0xb8   : > { %478 = vst [vmem:[#allocation2 + $0x61] sm:$0xff] %v2031_v18  ;;  %479 = vst [vmem:[#allocation2 + $0x69] sm:$0xff] %v2034_v19  ;;  %v2124_v46 = vld [vmem:[%s378_s12] sm:%s2041_s13]  ;;  %v2129_v47 = vld [vmem:[%s378_s12 + $0x8] sm:%s2041_s13]  ;;  %p1498_p1 = scmp.ne.s32.totalorder %s2525_s19, %s1497_s1  ;;  %p2749_p7 = scmp.ne.s32.totalorder %s2681_s15, 0 }
  0xb9   : > { %480 = vst [vmem:[#allocation2 + $0x79] sm:$0xff] %v2037_v20  ;;  %2710 = vst [vmem:[#allocation35_spill] sm:$0xff] %v2059_v25  ;;  %s1664_s30 = smov [#allocation11]  }
  0xba   : > { %2711 = vst [vmem:[#allocation36_spill] sm:$0xff] %v2062_v26  ;;  %2712 = vst [vmem:[#allocation37_spill] sm:$0xff] %v2065_v27  ;;  %v2134_v49 = vld [vmem:[#allocation2 + $0x18] sm:$0xff]  ;;  %p1499_p0 = pnand %p1498_p1, %p2749_p7  ;;  %s1501_s2 = sshll.u32 %s1664_s30, 4  ;;  %s1502_s2 = int_to_ptr.vmem [resolvable:$false] %s1501_s2 }
  0xbb   : > { %481 = vst [vmem:[#allocation2 + $0x81] sm:$0xff] %v2059_v25  ;;  %482 = vst [vmem:[#allocation2 + $0x91] sm:$0xff] %v2062_v26  ;;  %v578_v53 = vmul.f32 %v2050_v23, %v2134_v49  ;;  %v2144_v54 = vld [vmem:[#allocation2 + $0x1a] sm:$0xff]  ;;  %s1215_s3 = sshll.u32 %s2740_s18, 5  ;;  %s1503_s7 = scalar_lea.vmem %s1502_s2, 4096 }
  0xbc   : > { %483 = vst [vmem:[#allocation2 + $0x99] sm:$0xff] %v2065_v27  ;;  %2713 = vst [vmem:[#allocation38_spill] sm:$0xff] %v2077_v32  ;;  %v2146_v55 = vld [vmem:[#allocation2 + $0x30] sm:$0xff]  ;;  %v2148_v56 = vld [vmem:[#allocation2 + $0x20] sm:$0xff]  ;;  %v682_v6 = vmul.f32 %v2053_v24, %v2144_v54  ;;  %s1004_s28 = sadd.s32 %s1220_s4, %s1215_s3  ;;  %p1500_p3 = pneg %p1499_p0 }
  0xbd   : > { %2714 = vst [vmem:[#allocation39_spill] sm:$0xff] %v2085_v34  ;;  %484 = vst [vmem:[#allocation2 + $0xa9] sm:$0xff] %v2077_v32  ;;  %v579_v60 = vmul.f32 %v2050_v23, %v2148_v56  ;;  %v580_v61 = vmul.f32 %v2146_v55, %v2050_v23  ;;  %v2158_v62 = vld [vmem:[#allocation2 + $0x32] sm:$0xff]  ;;  %v2160_v63 = vld [vmem:[#allocation2 + $0x48] sm:$0xff]  ;;  %v594_v5 = vadd.f32 %v578_v53, %v542_v43  ;;  %s1216_s26 = sshll.u32 %s1004_s28, 7  ;;  %p1504_p8 = scmp.lt.s32.totalorder %s2525_s19, %s1502_s2 }
  0xbe   : > { %485 = vst [vmem:[#allocation2 + $0xb1] sm:$0xff] %v2080_v33  ;;  %496 = vst [vmem:[#allocation2 + $0x1] sm:$0xff] %v2085_v34  ;;  %v2162_v0 = vld [vmem:[#allocation2 + $0x38] sm:$0xff]  ;;  %v2172_v9 = vld [vmem:[#allocation2 + $0x50] sm:$0xff]  ;;  %v734_v28 = vmul.f32 %v2044_v21, %v2146_v55  ;;  %v684_v31 = vmul.f32 %v2053_v24, %v2158_v62  ;;  %v582_v36 = vmul.f32 %v2160_v63, %v2050_v23  ;;  %s2523_s8 = scalar_lea.hbm %s2748_s9, %s1216_s26  ;;  %p1505_p10 = scmp.lt.s32.totalorder %s1503_s7, %s1497_s1 }
  0xbf   : > { %2715 = vst [vmem:[#allocation40_spill] sm:$0xff] %v2102_v39  ;;  %2716 = vst [vmem:[#allocation41_spill] sm:$0xff] %v2105_v40  ;;  %v581_v8 = vmul.f32 %v2050_v23, %v2162_v0  ;;  %v596_v29 = vadd.f32 %v580_v61, %v544_v51  ;;  %v2182_v37 = vld [vmem:[#allocation2 + $0x4a] sm:$0xff]  ;;  %v2184_v38 = vld [vmem:[#allocation2 + $0x60] sm:$0xff]  ;;  %v646_v43 = vadd.f32 %v630_v30, %v594_v5 }
  0xc0   : > { %2717 = vst [vmem:[#allocation42_spill] sm:$0xff] %v2111_v42  ;;  %497 = vst [vmem:[#allocation2 + $0x9] sm:$0xff] %v2102_v39  ;;  %v595_v53 = vadd.f32 %v579_v60, %v543_v50  ;;  %v598_v51 = vadd.f32 %v582_v36, %v546_v58  ;;  %v583_v61 = vmul.f32 %v2050_v23, %v2172_v9  ;;  %v2196_v50 = vld [vmem:[#allocation2 + $0x62] sm:$0xff]  ;;  %v2202_v5 = vld [vmem:[#allocation2 + $0x78] sm:$0xff]  ;;  %p1506_p11 = por %p1505_p10, %p1504_p8 }
  0xc1   : > { %486 = vst [vmem:[#allocation2 + $0xc1] sm:$0xff] %v2105_v40  ;;  %487 = vst [vmem:[#allocation2 + $0xc9] sm:$0xff] %v2108_v41  ;;  %v597_v14 = vadd.f32 %v581_v8, %v545_v57  ;;  %v648_v10 = vadd.f32 %v632_v44, %v596_v29  ;;  %v548_v39 = vadd.f32 %v2009_v12, %v526_v2  ;;  %v2198_v57 = vld [vmem:[#allocation2 + $0x68] sm:$0xff] }
  0xc2   : > { %2718 = vst [vmem:[#allocation43_spill] sm:$0xff] %v2124_v46  ;;  %2719 = vst [vmem:[#allocation44_spill] sm:$0xff] %v2129_v47  ;;  %v584_v30 = vmul.f32 %v2184_v38, %v2050_v23  ;;  %v738_v58 = vmul.f32 %v2044_v21, %v2184_v38  ;;  %v527_v29 = vmul.f32 %v2025_v17, %v2059_v25  ;;  %p1507_p9 = pnand %p1506_p11, %p1500_p3 }
  0xc3   : > { %2720 = vst [vmem:[#allocation45_spill] sm:$0xff] %v2132_v48  ;;  %2721 = vst [vmem:[#allocation46_spill] sm:$0xff] %v2134_v49  ;;  %v686_v49 = vmul.f32 %v2053_v24, %v2182_v37  ;;  %v700_v44 = vadd.f32 %v684_v31, %v648_v10  ;;  %v2207_v8 = vadd.f32 %v633_v45, %v597_v14  ;;  %v2222_v45 = vld [vmem:[#allocation2 + $0x80] sm:$0xff] }
  0xc4   : > { %507 = vst [vmem:[#allocation2 + $0xd9] sm:$0xff] %v2124_v46  ;;  %508 = vst [vmem:[#allocation2 + $0xe1] sm:$0xff] %v2129_v47  ;;  %v600_v2 = vadd.f32 %v584_v30, %v548_v39  ;;  %v688_v10 = vmul.f32 %v2053_v24, %v2196_v50  ;;  %v549_v14 = vadd.f32 %v2009_v12, %v527_v29  ;;  %v2232_v31 = vld [vmem:[#allocation2 + $0x7a] sm:$0xff] }
  0xc5   : > { %2722 = vst [vmem:[#allocation47_spill] sm:$0xff] %v2144_v54  ;;  %2723 = vst [vmem:[#allocation48_spill] sm:$0xff] %v2146_v55  ;;  %v736_v55 = vmul.f32 %v2044_v21, %v2160_v63  ;;  %v698_v54 = vadd.f32 %v682_v6, %v646_v43  ;;  %v2205_v6 = vadd.f32 %v2088_v35, %v595_v53  ;;  %v2234_v53 = vld [vmem:[#allocation2 + $0x90] sm:$0xff] }
  0xc6   : > { %2724 = vst [vmem:[#allocation49_spill] sm:$0xff] %v2148_v56  ;;  %2725 = vst [vmem:[#allocation50_spill] sm:$0xff] %v2158_v62  ;;  %v547_v56 = vadd.f32 %v2009_v12, %v525_v59  ;;  %v650_v59 = vadd.f32 %v634_v52, %v598_v51  ;;  %v585_v52 = vmul.f32 %v2050_v23, %v2198_v57 }
  0xc7   : > { %v2211_v36 = vadd.f32 %v734_v28, %v698_v54  ;;  %v740_v35 = vmul.f32 %v2044_v21, %v2202_v5  ;;  %v528_v39 = vmul.f32 %v2025_v17, %v2062_v26  ;;  %v2224_v54 = vadd.f32 %v736_v55, %v700_v44  ;;  %2726 = vst [vmem:[#allocation51_spill] sm:$0xff] %v2234_v53 }
  0xc8   : > { %v599_v60 = vadd.f32 %v583_v61, %v547_v56  ;;  %v702_v43 = vadd.f32 %v686_v49, %v650_v59  ;;  %v652_v56 = vadd.f32 %v636_v11, %v600_v2  ;;  %v637_v28 = vmul.f32 %v2013_v13, %v2034_v19  ;;  %v2247_v2 = vld [vmem:[#allocation2 + $0x98] sm:$0xff] }
  0xc9   : > { %v586_v11 = vmul.f32 %v2202_v5, %v2050_v23  ;;  %v550_v30 = vadd.f32 %v2009_v12, %v528_v39  ;;  %v638_v55 = vmul.f32 %v2013_v13, %v2037_v20  ;;  %v529_v44 = vmul.f32 %v2025_v17, %v2065_v27 }
  0xca   : > { %v2226_v49 = vadd.f32 %v635_v1, %v599_v60  ;;  %v2236_v51 = vadd.f32 %v738_v58, %v702_v43  ;;  %v704_v61 = vadd.f32 %v688_v10, %v652_v56  ;;  %v601_v1 = vadd.f32 %v585_v52, %v549_v14 }
  0xcb   : > { %v587_v59 = vmul.f32 %v2050_v23, %v2222_v45  ;;  %v530_v60 = vmul.f32 %v2025_v17, %v2077_v32  ;;  %v602_v58 = vadd.f32 %v586_v11, %v550_v30  ;;  %v690_v29 = vmul.f32 %v2053_v24, %v2232_v31  ;;  %v2261_v11 = vld [vmem:[#allocation2 + $0x92] sm:$0xff]  ;;  %v2263_v30 = vld [vmem:[#allocation2 + $0xa8] sm:$0xff] }
  0xcc   : > { %v742_v43 = vmul.f32 %v2044_v21, %v2234_v53  ;;  %v588_v10 = vmul.f32 %v2234_v53, %v2050_v23  ;;  %v551_v52 = vadd.f32 %v2009_v12, %v529_v44  ;;  %v639_v56 = vmul.f32 %v2013_v13, %v2059_v25 }
  0xcd   : > { %v552_v14 = vadd.f32 %v2009_v12, %v530_v60  ;;  %v640_v39 = vmul.f32 %v2013_v13, %v2062_v26  ;;  %v2265_v48 = vadd.f32 %v740_v35, %v704_v61  ;;  %v654_v34 = vadd.f32 %v638_v55, %v602_v58  ;;  %v2280_v55 = vld [vmem:[#allocation2 + $0xaa] sm:$0xff] }
  0xce   : > { %v531_v42 = vmul.f32 %v2025_v17, %v2080_v33  ;;  %v589_v44 = vmul.f32 %v2050_v23, %v2247_v2  ;;  %v2271_v47 = vadd.f32 %v637_v28, %v601_v1  ;;  %v603_v46 = vadd.f32 %v587_v59, %v551_v52  ;;  %v2282_v58 = vld [vmem:[#allocation2 + $0xb0] sm:$0xff] }
  0xcf   : > { %v604_v60 = vadd.f32 %v588_v10, %v552_v14  ;;  %v532_v26 = vmul.f32 %v2025_v17, %v2105_v40  ;;  %v706_v53 = vadd.f32 %v690_v29, %v654_v34  ;;  %v692_v25 = vmul.f32 %v2053_v24, %v2261_v11  ;;  %v2289_v29 = vld [vmem:[#allocation2 + $0xc0] sm:$0xff] }
  0xd0   : > { %v553_v35 = vadd.f32 %v2009_v12, %v531_v42  ;;  %v590_v61 = vmul.f32 %v2263_v30, %v2050_v23  ;;  %v641_v1 = vmul.f32 %v2013_v13, %v2065_v27  ;;  %v642_v34 = vmul.f32 %v2013_v13, %v2077_v32  ;;  %v2303_v27 = vld [vmem:[#allocation2 + $0x22] sm:$0xff] }
  0xd1   : > { %v656_v28 = vadd.f32 %v640_v39, %v604_v60  ;;  %v554_v59 = vadd.f32 %v2009_v12, %v532_v26  ;;  %v2291_v10 = vadd.f32 %v639_v56, %v603_v46  ;;  %v744_v42 = vmul.f32 %v2044_v21, %v2263_v30  ;;  %v511_v39 = vld [vmem:[#allocation9 + $0x8] sm:$0x7] }
  0xd2   : > { %v605_v52 = vadd.f32 %v589_v44, %v553_v35  ;;  %v533_v14 = vmul.f32 %v2025_v17, %v2108_v41  ;;  %v2297_v60 = vadd.f32 %v742_v43, %v706_v53  ;;  %v694_v26 = vmul.f32 %v2053_v24, %v2280_v55  ;;  %v2310_v53 = vld [vmem:[#allocation2 + $0xb2] sm:$0xff] }
  0xd3   : > { %v606_v40 = vadd.f32 %v590_v61, %v554_v59  ;;  %v591_v32 = vmul.f32 %v2050_v23, %v2282_v58  ;;  %v708_v46 = vadd.f32 %v692_v25, %v656_v28  ;;  %v746_v56 = vmul.f32 %v2044_v21, %v2289_v29  ;;  %v2319_v28 = vld [vmem:[#allocation2 + $0xc8] sm:$0xff] }
  0xd4   : > { %v555_v44 = vadd.f32 %v2009_v12, %v533_v14  ;;  %v643_v17 = vmul.f32 %v2013_v13, %v2080_v33  ;;  %v2312_v43 = vadd.f32 %v641_v1, %v605_v52  ;;  %v786_v61 = vmul.f32 %v2047_v22, %v2158_v62 }
  0xd5   : > { %v658_v35 = vadd.f32 %v642_v34, %v606_v40  ;;  %v2317_v59 = vrot.slane %v511_v39, %v1993_v4  ;;  %v2322_v23 = vrot.slane %v511_v39, %v1991_v3  ;;  %v2325_v14 = vrot.slane %v511_v39, %v1996_v7 }
  0xd6   : > { %v607_v25 = vadd.f32 %v591_v32, %v555_v44  ;;  %v683_v1 = vmul.f32 %v2053_v24, %v2303_v27  ;;  %v695_v40 = vmul.f32 %v2053_v24, %v2310_v53  ;;  %v802_v34 = vadd.f32 %v786_v61, %v2211_v36  ;;  %v2334_v32 = vld [vmem:[#allocation2 + $0x3a] sm:$0xff]  ;;  %v924_v61 = vld [vmem:[#allocation2 + $0x52] sm:$0xff] }
  0xd7   : > { %v710_v52 = vadd.f32 %v694_v26, %v658_v35  ;;  %v839_v4 = vmul.f32 %v2317_v59, %v2160_v63  ;;  %v891_v3 = vmul.f32 %v2322_v23, %v2019_v15  ;;  %v735_v39 = vmul.f32 %v2044_v21, %v2162_v0 }
  0xd8   : > { %v659_v44 = vadd.f32 %v643_v17, %v607_v25  ;;  %v699_v7 = vadd.f32 %v683_v1, %v2205_v6  ;;  %v2341_v26 = vadd.f32 %v744_v42, %v708_v46  ;;  %v747_v35 = vmul.f32 %v2044_v21, %v2319_v28 }
  0xd9   : > { %v855_v36 = vadd.f32 %v839_v4, %v802_v34  ;;  %v943_v63 = vmul.f32 %v2325_v14, %v2182_v37  ;;  %v2347_v62 = vadd.f32 %v746_v56, %v710_v52  ;;  %v787_v15 = vmul.f32 %v2047_v22, %v2334_v32 }
  0xda   : > { %v711_v17 = vadd.f32 %v695_v40, %v659_v44  ;;  %v751_v25 = vadd.f32 %v735_v39, %v699_v7  ;;  %v840_v42 = vmul.f32 %v2317_v59, %v2172_v9  ;;  %v892_v46 = vmul.f32 %v2322_v23, %v2022_v16 }
  0xdb   : > { %v907_v6 = vadd.f32 %v891_v3, %v855_v36  ;;  %v788_v1 = vmul.f32 %v2047_v22, %v2182_v37  ;;  %v944_v56 = vmul.f32 %v2325_v14, %v924_v61  ;;  %v841_v52 = vmul.f32 %v2317_v59, %v2184_v38  ;;  %v926_v36 = vld [vmem:[#allocation2 + $0x6a] sm:$0xff] }
  0xdc   : > { %v803_v34 = vadd.f32 %v787_v15, %v751_v25  ;;  %v685_v40 = vmul.f32 %v2334_v32, %v2053_v24  ;;  %v2362_v4 = vadd.f32 %v747_v35, %v711_v17  ;;  %v893_v16 = vmul.f32 %v2322_v23, %v2031_v18 }
  0xdd   : > { %v959_v44 = vadd.f32 %v943_v63, %v907_v6  ;;  %v804_v3 = vadd.f32 %v788_v1, %v2224_v54  ;;  %v945_v37 = vmul.f32 %v2325_v14, %v2196_v50  ;;  %v737_v38 = vmul.f32 %v2044_v21, %v2172_v9 }
  0xde   : > { %v856_v7 = vadd.f32 %v840_v42, %v803_v34  ;;  %v701_v39 = vadd.f32 %v685_v40, %v2207_v8  ;;  %v789_v54 = vmul.f32 %v924_v61, %v2047_v22  ;;  %v842_v18 = vmul.f32 %v2317_v59, %v2198_v57 }
  0xdf   : > { %975 = vst [vmem:[%s2374_s0 + $0x10] sm:$0xff] %v959_v44  ;;  %v857_v35 = vadd.f32 %v841_v52, %v804_v3  ;;  %v790_v63 = vmul.f32 %v2047_v22, %v2196_v50  ;;  %v894_v9 = vmul.f32 %v2322_v23, %v2034_v19  ;;  %v843_v25 = vmul.f32 %v2317_v59, %v2202_v5 }
  0xe0   : > { %v908_v17 = vadd.f32 %v892_v46, %v856_v7  ;;  %v753_v8 = vadd.f32 %v737_v38, %v701_v39  ;;  %v895_v42 = vmul.f32 %v2322_v23, %v2037_v20  ;;  %v687_v1 = vmul.f32 %v924_v61, %v2053_v24  ;;  %v2728_v39 = vld [vmem:[#allocation51_spill] sm:$0xff] }
  0xe1   : > { %v909_v15 = vadd.f32 %v893_v16, %v857_v35  ;;  %v806_v6 = vadd.f32 %v790_v63, %v2236_v51  ;;  %v946_v46 = vmul.f32 %v2325_v14, %v926_v36  ;;  %v947_v52 = vmul.f32 %v2325_v14, %v2232_v31 }
  0xe2   : > { %v960_v34 = vadd.f32 %v944_v56, %v908_v17  ;;  %v805_v50 = vadd.f32 %v789_v54, %v753_v8  ;;  %v703_v5 = vadd.f32 %v687_v1, %v2226_v49  ;;  %v739_v51 = vmul.f32 %v2044_v21, %v2198_v57  ;;  %v928_v56 = vld [vmem:[#allocation2 + $0x82] sm:$0xff] }
  0xe3   : > { %v961_v19 = vadd.f32 %v945_v37, %v909_v15  ;;  %v859_v40 = vadd.f32 %v843_v25, %v806_v6  ;;  %v791_v20 = vmul.f32 %v926_v36, %v2047_v22  ;;  %v844_v61 = vmul.f32 %v2317_v59, %v2222_v45  ;;  %v2727_v37 = vld [vmem:[#allocation35_spill] sm:$0xff]  ;;  %v2729_v54 = vld [vmem:[#allocation36_spill] sm:$0xff] }
  0xe4   : > { %976 = vst [vmem:[%s2374_s0 + $0x18] sm:$0xff] %v960_v34  ;;  %v858_v44 = vadd.f32 %v842_v18, %v805_v50  ;;  %v792_v3 = vmul.f32 %v2047_v22, %v2232_v31  ;;  %v755_v7 = vadd.f32 %v739_v51, %v703_v5  ;;  %v896_v49 = vmul.f32 %v2322_v23, %v2727_v37  ;;  %v930_v34 = vld [vmem:[#allocation2 + $0x9a] sm:$0xff]  ;;  %v2731_v51 = vld [vmem:[#allocation38_spill] sm:$0xff] }
  0xe5   : > { %977 = vst [vmem:[%s2374_s0 + $0x20] sm:$0xff] %v961_v19  ;;  %v911_v16 = vadd.f32 %v895_v42, %v859_v40  ;;  %v845_v57 = vmul.f32 %v2317_v59, %v2728_v39  ;;  %v897_v18 = vmul.f32 %v2322_v23, %v2729_v54  ;;  %v689_v63 = vmul.f32 %v926_v36, %v2053_v24  ;;  %v2730_v19 = vld [vmem:[#allocation37_spill] sm:$0xff] }
  0xe6   : > { %v910_v38 = vadd.f32 %v894_v9, %v858_v44  ;;  %v808_v35 = vadd.f32 %v792_v3, %v2265_v48  ;;  %v807_v17 = vadd.f32 %v791_v20, %v755_v7  ;;  %v948_v8 = vmul.f32 %v2325_v14, %v928_v56 }
  0xe7   : > { %v963_v31 = vadd.f32 %v947_v52, %v911_v16  ;;  %v949_v25 = vmul.f32 %v2325_v14, %v2261_v11  ;;  %v705_v42 = vadd.f32 %v689_v63, %v2271_v47  ;;  %v741_v48 = vmul.f32 %v2044_v21, %v2222_v45 }
  0xe8   : > { %v962_v15 = vadd.f32 %v946_v46, %v910_v38  ;;  %v861_v6 = vadd.f32 %v845_v57, %v808_v35  ;;  %v860_v9 = vadd.f32 %v844_v61, %v807_v17  ;;  %v793_v1 = vmul.f32 %v928_v56, %v2047_v22  ;;  %v933_v38 = vld [vmem:[#allocation2 + $0xc2] sm:$0xff] }
  0xe9   : > { %979 = vst [vmem:[%s2374_s0 + $0x30] sm:$0xff] %v963_v31  ;;  %v846_v36 = vmul.f32 %v2317_v59, %v2247_v2  ;;  %v794_v50 = vmul.f32 %v2047_v22, %v2261_v11  ;;  %v757_v46 = vadd.f32 %v741_v48, %v705_v42  ;;  %v898_v47 = vmul.f32 %v2322_v23, %v2730_v19  ;;  %v2732_v31 = vld [vmem:[#allocation41_spill] sm:$0xff] }
  0xea   : > { %978 = vst [vmem:[%s2374_s0 + $0x28] sm:$0xff] %v962_v15  ;;  %v913_v52 = vadd.f32 %v897_v18, %v861_v6  ;;  %v847_v45 = vmul.f32 %v2317_v59, %v2263_v30  ;;  %v912_v40 = vadd.f32 %v896_v49, %v860_v9  ;;  %v899_v44 = vmul.f32 %v2322_v23, %v2731_v51  ;;  %v934_v9 = vld [vmem:[#allocation2 + $0xca] sm:$0xff] }
  0xeb   : > { %v810_v5 = vadd.f32 %v794_v50, %v2297_v60  ;;  %v691_v20 = vmul.f32 %v928_v56, %v2053_v24  ;;  %v809_v61 = vadd.f32 %v793_v1, %v757_v46  ;;  %v950_v3 = vmul.f32 %v2325_v14, %v930_v34  ;;  %v832_v1 = vld [vmem:[#allocation2 + $0xe0] sm:$0xff] }
  0xec   : > { %v965_v11 = vadd.f32 %v949_v25, %v913_v52  ;;  %v951_v16 = vmul.f32 %v2325_v14, %v2280_v55  ;;  %v964_v7 = vadd.f32 %v948_v8, %v912_v40  ;;  %v743_v60 = vmul.f32 %v2044_v21, %v2247_v2 }
  0xed   : > { %v863_v37 = vadd.f32 %v847_v45, %v810_v5  ;;  %v707_v30 = vadd.f32 %v691_v20, %v2291_v10  ;;  %v862_v49 = vadd.f32 %v846_v36, %v809_v61  ;;  %v795_v39 = vmul.f32 %v930_v34, %v2047_v22  ;;  %v556_v45 = vld [vmem:[#allocation2] sm:$0xff] }
  0xee   : > { %981 = vst [vmem:[%s2374_s0 + $0x40] sm:$0xff] %v965_v11  ;;  %v848_v56 = vmul.f32 %v2317_v59, %v2282_v58  ;;  %v796_v57 = vmul.f32 %v2047_v22, %v2280_v55  ;;  %980 = vst [vmem:[%s2374_s0 + $0x38] sm:$0xff] %v964_v7  ;;  %v900_v10 = vmul.f32 %v2322_v23, %v2080_v33  ;;  %v831_v55 = vld [vmem:[#allocation2 + $0xd8] sm:$0xff] }
  0xef   : > { %v915_v35 = vadd.f32 %v899_v44, %v863_v37  ;;  %v759_v54 = vadd.f32 %v743_v60, %v707_v30  ;;  %v849_v2 = vmul.f32 %v2317_v59, %v2289_v29  ;;  %v914_v18 = vadd.f32 %v898_v47, %v862_v49  ;;  %v2733_v47 = vld [vmem:[#allocation43_spill] sm:$0xff]  ;;  %v936_v30 = vld [vmem:[#allocation2 + $0xe2] sm:$0xff] }
  0xf0   : > { %v812_v63 = vadd.f32 %v796_v57, %v2341_v26  ;;  %v901_v17 = vmul.f32 %v2322_v23, %v2732_v31  ;;  %v693_v8 = vmul.f32 %v930_v34, %v2053_v24  ;;  %v952_v6 = vmul.f32 %v2325_v14, %v2310_v53  ;;  %v935_v61 = vld [vmem:[#allocation2 + $0xda] sm:$0xff]  ;;  %v660_v49 = vld [vmem:[#allocation2 + $0x2] sm:$0xff] }
  0xf1   : > { %v967_v25 = vadd.f32 %v951_v16, %v915_v35  ;;  %v811_v15 = vadd.f32 %v795_v39, %v759_v54  ;;  %v953_v33 = vmul.f32 %v2325_v14, %v933_v38  ;;  %v966_v42 = vadd.f32 %v950_v3, %v914_v18  ;;  %v2736_v39 = vld [vmem:[#allocation42_spill] sm:$0xff] }
  0xf2   : > { %v865_v29 = vadd.f32 %v849_v2, %v812_v63  ;;  %v709_v48 = vadd.f32 %v693_v8, %v2312_v43  ;;  %v745_v26 = vmul.f32 %v2044_v21, %v2282_v58  ;;  %v797_v34 = vmul.f32 %v2047_v22, %v2310_v53  ;;  %v557_v35 = vld [vmem:[#allocation2 + $0x8] sm:$0xff] }
  0xf3   : > { %983 = vst [vmem:[%s2374_s0 + $0x50] sm:$0xff] %v967_v25  ;;  %v864_v36 = vadd.f32 %v848_v56, %v811_v15  ;;  %v798_v50 = vmul.f32 %v933_v38, %v2047_v22  ;;  %v851_v52 = vmul.f32 %v2317_v59, %v831_v55  ;;  %982 = vst [vmem:[%s2374_s0 + $0x48] sm:$0xff] %v966_v42  ;;  %v2737_v38 = vld [vmem:[#allocation39_spill] sm:$0xff] }
  0xf4   : > { %v917_v46 = vadd.f32 %v901_v17, %v865_v29  ;;  %v761_v19 = vadd.f32 %v745_v26, %v709_v48  ;;  %v850_v43 = vmul.f32 %v2317_v59, %v2319_v28  ;;  %v903_v58 = vmul.f32 %v2733_v47, %v2322_v23  ;;  %v2734_v28 = vld [vmem:[#allocation44_spill] sm:$0xff]  ;;  %v661_v29 = vld [vmem:[#allocation2 + $0xa] sm:$0xff] }
  0xf5   : > { %v916_v40 = vadd.f32 %v900_v10, %v864_v36  ;;  %v814_v5 = vadd.f32 %v798_v50, %v2347_v62  ;;  %v799_v53 = vmul.f32 %v934_v9, %v2047_v22  ;;  %v852_v51 = vmul.f32 %v2317_v59, %v832_v1  ;;  %v2735_v62 = vld [vmem:[#allocation34_spill] sm:$0xff]  ;;  %v2742_v50 = vld [vmem:[#allocation47_spill] sm:$0xff] }
  0xf6   : > { %v969_v44 = vadd.f32 %v953_v33, %v917_v46  ;;  %v813_v20 = vadd.f32 %v797_v34, %v761_v19  ;;  %v902_v11 = vmul.f32 %v2322_v23, %v2108_v41  ;;  %v904_v3 = vmul.f32 %v2734_v28, %v2322_v23  ;;  %v2739_v33 = vld [vmem:[#allocation40_spill] sm:$0xff] }
  0xf7   : > { %v968_v16 = vadd.f32 %v952_v6, %v916_v40  ;;  %v867_v7 = vadd.f32 %v851_v52, %v814_v5  ;;  %v815_v37 = vadd.f32 %v799_v53, %v2362_v4  ;;  %v576_v60 = vmul.f32 %v2735_v62, %v556_v45  ;;  %v2738_v4 = vld [vmem:[#allocation45_spill] sm:$0xff] }
  0xf8   : > { %v541_v56 = vadd.f32 %v2009_v12, %v2736_v39  ;;  %985 = vst [vmem:[%s2374_s0 + $0x60] sm:$0xff] %v969_v44  ;;  %v866_v57 = vadd.f32 %v850_v43, %v813_v20  ;;  %v628_v41 = vmul.f32 %v2737_v38, %v2013_v13  ;;  %v955_v10 = vmul.f32 %v2325_v14, %v935_v61  ;;  %v2745_v5 = vld [vmem:[#allocation49_spill] sm:$0xff]  ;;  %v2746_v20 = vld [vmem:[#allocation50_spill] sm:$0xff] }
  0xf9   : > { %984 = vst [vmem:[%s2374_s0 + $0x58] sm:$0xff] %v968_v16  ;;  %v919_v54 = vadd.f32 %v903_v58, %v867_v7  ;;  %v868_v2 = vadd.f32 %v852_v51, %v815_v37  ;;  %v592_v18 = vadd.f32 %v576_v60, %v2738_v4  ;;  %v954_v31 = vmul.f32 %v2325_v14, %v934_v9  ;;  %v2741_v9 = vld [vmem:[#allocation46_spill] sm:$0xff]  ;;  %v2744_v58 = vld [vmem:[#allocation32_spill] sm:$0xff] }
  0xfa   : > { %v918_v63 = vadd.f32 %v902_v11, %v866_v57  ;;  %v956_v12 = vmul.f32 %v2325_v14, %v936_v30  ;;  %v680_v17 = vmul.f32 %v2053_v24, %v660_v49  ;;  %v577_v15 = vmul.f32 %v2735_v62, %v557_v35 }
  0xfb   : > { %v971_v8 = vadd.f32 %v955_v10, %v919_v54  ;;  %v920_v55 = vadd.f32 %v904_v3, %v868_v2  ;;  %v644_v25 = vadd.f32 %v628_v41, %v592_v18  ;;  %v629_v42 = vmul.f32 %v2739_v33, %v2013_v13  ;;  %v2743_v13 = vld [vmem:[#allocation48_spill] sm:$0xff] }
  0xfc   : > { %v970_v6 = vadd.f32 %v954_v31, %v918_v63  ;;  %v732_v1 = vmul.f32 %v2044_v21, %v2741_v9  ;;  %v593_v36 = vadd.f32 %v577_v15, %v541_v56  ;;  %v784_v52 = vmul.f32 %v2047_v22, %v2742_v50 }
  0xfd   : > { %987 = vst [vmem:[%s2374_s0 + $0x70] sm:$0xff] %v971_v8  ;;  %v972_v48 = vadd.f32 %v956_v12, %v920_v55  ;;  %v696_v26 = vadd.f32 %v680_v17, %v644_v25  ;;  %v681_v19 = vmul.f32 %v2053_v24, %v661_v29  ;;  %v837_v43 = vmul.f32 %v2317_v59, %v2743_v13 }
  0xfe   : > { %986 = vst [vmem:[%s2374_s0 + $0x68] sm:$0xff] %v970_v6  ;;  %v645_v46 = vadd.f32 %v629_v42, %v593_v36  ;;  %v889_v45 = vmul.f32 %v2322_v23, %v2744_v58  ;;  %v733_v53 = vmul.f32 %v2044_v21, %v2745_v5  ;;  %v785_v24 = vmul.f32 %v2047_v22, %v2303_v27  ;;  %v2747_v21 = vld [vmem:[#allocation33_spill] sm:$0xff] }
  0xff   : > { %988 = vst [vmem:[%s2374_s0 + $0x78] sm:$0xff] %v972_v48  ;;  %v748_v34 = vadd.f32 %v732_v1, %v696_v26  ;;  %v941_v11 = vmul.f32 %v2325_v14, %v2746_v20  ;;  %v838_v3 = vmul.f32 %v2317_v59, %v2162_v0  ;;  %v890_v16 = vmul.f32 %v2322_v23, %v2747_v21 }
 0x100   : > { %v697_v40 = vadd.f32 %v681_v19, %v645_v46  ;;  %v942_v27 = vmul.f32 %v2325_v14, %v2334_v32 }
 0x101   : > { %v800_v47 = vadd.f32 %v784_v52, %v748_v34 }
 0x102   : > { %v749_v44 = vadd.f32 %v733_v53, %v697_v40 }
 0x103   : > { %v853_v51 = vadd.f32 %v837_v43, %v800_v47 }
 0x104   : > { %v801_v28 = vadd.f32 %v785_v24, %v749_v44 }
 0x105   : > { %v905_v61 = vadd.f32 %v889_v45, %v853_v51 }
 0x106   : > { %v854_v37 = vadd.f32 %v838_v3, %v801_v28 }
 0x107   : > { %v957_v7 = vadd.f32 %v941_v11, %v905_v61 }
 0x108   : > { %v906_v22 = vadd.f32 %v890_v16, %v854_v37 }
 0x109   : > { %973 = vst [vmem:[%s2374_s0] sm:$0xff] %v957_v7 }
 0x10a   : > { %v958_v23 = vadd.f32 %v942_v27, %v906_v22 }
 0x10c   : > { %974 = vst [vmem:[%s2374_s0 + $0x8] sm:$0xff] %v958_v23 }
 0x10d   : > { %1510 = shalt.err (!%p1507_p9)
}
 0x10e   : > { %s1511_s12 = scalar_lea.hbm %s2523_s8, 2048  ;;  %s1515_s14 = scalar_lea.hbm %s2748_s9, 8192 }
 0x10f   : > { %p1512_p12 = scmp.ne.s32.totalorder %s2523_s8, %s1511_s12  ;;  %p1516_p6 = scmp.lt.s32.totalorder %s2523_s8, %s2748_s9 }
 0x110   : > { %p1517_p4 = scmp.lt.s32.totalorder %s1515_s14, %s1511_s12 }
 0x111   : > { %p1513_p5 = pnand %p1512_p12, %p2749_p7 }
 0x112   : > { %p1518_p2 = por %p1517_p4, %p1516_p6 }
 0x113   : > { %p1514_p13 = pneg %p1513_p5 }
 0x115   : > { %p1519_p1 = pnand %p1518_p2, %p1514_p13 }
 0x117   : > { %1522 = shalt.err (!%p1519_p1)
}
 0x118   : > { %s1665_s13 = smov 128   ;;  %s1666_s0 = smov 8  }
 0x119   : > { %1231 = dma.vmem_to_hbm [thread:$0]  (%p2749_p7), %s2525_s19, 2048, %s2523_s8, %s990_s27, %s1665_s13, %s1665_s13, %s1666_s0  }
 0x11a PF: > { %p1254_p0 = scmp.ge.s32.totalorder %s1653_s6, 2  ;;  %s1022_s18 = sand.u32 1, %s1625_s24  }
 0x11b   : > { %p2750_p3 = scmp.ne.s32.totalorder %s2682_s16, 0  ;;  %s1023_s4 = scalar_lea.sflag [#allocation5], %s1022_s18 }
 0x11d   : > { %p1248_p8 = pnand %p1254_p0, %p2750_p3 }
 0x11f   : > { %p1249_p10 = pneg %p1248_p8 }
 0x121   : > { %1596 = dma.done.wait (%p1249_p10), %s1023_s4, 2048  }
 0x122   : > { %1598 = vsyncadd (%p1249_p10), %s1023_s4, 4294965248  ;;  %s25_s6 = sadd.s32 1, %s1653_s6   ;;  %s2752_s18 = sld [smem:[#allocation18_spill]] }
 0x123   : > { %p2556_p11 = scmp.ge.s32.totalorder %s25_s6, 6   ;;  %s2753_s19 = sld [smem:[#allocation19_spill]] }
 0x124   : > { %s2754_s15 = sld [smem:[#allocation20_spill]]  ;;  %s2762_s21 = smov %s1617_s22 }
 0x125   : > { %s2755_s23 = sld [smem:[#allocation30_spill]]  ;;  %s2764_s24 = smov %s1629_s25 }
 0x126   : > { %s2756_s28 = sld [smem:[#allocation21_spill]] }
 0x127   : > { %s2757_s26 = sld [smem:[#allocation31_spill]] }
 0x128   : > { %s2758_s27 = sld [smem:[#allocation24_spill]] }
 0x129   : > { %s2759_s16 = sld [smem:[#allocation25_spill]] }
 0x12a   : > { %s2760_s29 = sld [smem:[#allocation26_spill]]  ;;  %s2763_s22 = smov %s2754_s15 }
 0x12b   : > { %s2761_s30 = sld [smem:[#allocation27_spill]]  ;;  %24 = sbr.rel (!%p2556_p11) target bundleno = 20 (0x14), region = 120 }
 0x12c   : > { %s2765_s25 = smov %s2756_s28 }
 0x12f   : > { %s2766_s28 = smov %s2759_s16 }
 0x130   :  { %1028 = vsyncpa [#allocation4], 1 }
 0x131   :  { %1030 = vsyncpa [#allocation4 + $0x1], 1 }
 0x132   :  { %1031 = vsyncpa [#allocation7], 1 }
 0x133   :  { %1033 = vsyncpa [#allocation7 + $0x1], 1 }
 0x134   :  { %1034 = vsyncpa [#allocation10], 1 }
 0x135   :  { %1035 = vsyncpa [#allocation5], 1 }
 0x136   :  { %1037 = vsyncpa [#allocation5 + $0x1], 1 }

</bundles_post_ra>
